<compile_context>
chip_gen: v7x
topology: tpu7x:2x2x1
jax: 0.10.0
libtpu: 0.0.40
codegen_flags: <defaults>
</compile_context>

<pallas_src>
import jax
import jax.numpy as jnp
from jax.experimental import pallas as pl
from jax.experimental.pallas import tpu as pltpu

LANE = 128
SUBLANE = 8


def _round_up(n, m):
    return ((n + m - 1) // m) * m


def _make_kernel(num_hidden):
    """Fused MLP kernel: num_hidden x (Linear + PReLU) blocks + final Linear.

    All normalization / BatchNorm / de-normalization is pre-folded into the
    Linear weights and biases by the wrapper.
    """

    def kernel(*refs):
        # refs = [alphas (SMEM), x_tile, (Wt, b) * num_hidden, Wt_final, b_final, out]
        alpha_ref = refs[0]          # SMEM (num_hidden,) f32 (or (1,) dummy)
        x_ref = refs[1]              # VMEM (tb, D0)
        o_ref = refs[-1]             # VMEM (tb, Dout)
        params = refs[2:-1]

        h = x_ref[...]
        idx = 0
        for li in range(num_hidden):
            wt_ref, b_ref = params[idx], params[idx + 1]
            idx += 2
            # Linear (MXU, f32 accumulation); bias broadcast over rows.
            h = jnp.dot(h.astype(wt_ref.dtype), wt_ref[...],
                        preferred_element_type=jnp.float32) + b_ref[...]
            # PReLU with a single shared alpha (nn.PReLU() default), from SMEM.
            a = alpha_ref[li]
            h = jnp.where(h >= 0.0, h, a * h)

        wt_ref, b_ref = params[idx], params[idx + 1]
        o_ref[...] = jnp.dot(h.astype(wt_ref.dtype), wt_ref[...],
                             preferred_element_type=jnp.float32) + b_ref[...]

    return kernel


def mlppca_forward(x, inputs_mean, inputs_std, outputs_mean, outputs_std,
                   hidden_layers, final_layer, *, tb=1024, bn_eps=1e-5,
                   matmul_dtype=jnp.bfloat16, single_buffer_weights=False):
    """Fused MLPPCA forward pass.

    Args:
      x: (B, D0) f32 input.
      inputs_mean, inputs_std: (D0,) raw statistics. The +1e-6 epsilon is added
        HERE (matching the PyTorch module constructor) — do NOT pre-add it.
      outputs_mean, outputs_std: (Dout,) output statistics.
      hidden_layers: list of tuples per hidden block:
        (W (out, in), b (out,), bn_gamma (out,), bn_beta (out,),
         bn_running_mean (out,), bn_running_var (out,), prelu_alpha scalar).
      final_layer: (W (out, in), b (out,)).
      tb: requested batch tile (rows per grid step), multiple of 8.  Pick the
        largest value that still leaves >= 2 grid steps; the wrapper caps it
        automatically (keeps both TensorCores busy on v7x) and only pads the
        batch when B is not a multiple of the effective tile.
      matmul_dtype: dtype of MXU operands for hidden/final layers (bfloat16
        default; pass jnp.float32 for bit-tight accuracy).  The first layer's
        weight always stays f32 since it carries the folded input-norm /
        BatchNorm scales.  Accumulation is always f32.
      single_buffer_weights: add pipeline_mode=pl.Buffered(1) to the replicated
        weight/bias BlockSpecs (recommended on v7x, where VMEM is 64 MiB).
    """
    B, D0 = x.shape
    Dout = final_layer[0].shape[0]
    num_hidden = len(hidden_layers)
    assert tb % SUBLANE == 0 and tb >= SUBLANE, "tb must be a multiple of 8"

    # ---- Fold input normalization / BatchNorm / output de-normalization
    #      into the Linear weights and biases (glue-code, runs once). --------
    inputs_std_eps = inputs_std.astype(jnp.float32) + 1e-6
    pre_scale = 1.0 / inputs_std_eps                           # (x - m) / s folded
    pre_shift = -inputs_mean.astype(jnp.float32) * pre_scale   # into the first layer

    folded = []
    alphas = []
    for (w, b, gamma, beta, rmean, rvar, alpha) in hidden_layers:
        wt = jnp.transpose(w).astype(jnp.float32)              # (in, out)
        bn_scale = gamma / jnp.sqrt(rvar + bn_eps)
        bn_shift = beta - rmean * bn_scale
        wt_eff = (wt * pre_scale[:, None]) * bn_scale[None, :]
        b_eff = (b + pre_shift @ wt) * bn_scale + bn_shift
        folded.append((wt_eff, b_eff))
        alphas.append(jnp.asarray(alpha, jnp.float32).reshape(()))
        dout = wt.shape[1]
        pre_scale = jnp.ones((dout,), jnp.float32)
        pre_shift = jnp.zeros((dout,), jnp.float32)

    w_f, b_f = final_layer
    wt_f = jnp.transpose(w_f).astype(jnp.float32)
    os_f = outputs_std.astype(jnp.float32)
    om_f = outputs_mean.astype(jnp.float32)
    wt_eff = (wt_f * pre_scale[:, None]) * os_f[None, :]
    b_eff = (b_f + pre_shift @ wt_f) * os_f + om_f
    folded.append((wt_eff, b_eff))

    # ---- Pad ONLY internal hidden widths to 128 lanes.  The HBM-facing dims
    #      (first layer input = D0, last layer output = Dout) stay unpadded.
    num_layers = len(folded)
    padded_params = []
    for li, (wt_e, b_e) in enumerate(folded):
        din, dout = wt_e.shape
        dinp = din if li == 0 else _round_up(din, LANE)
        doutp = dout if li == num_layers - 1 else _round_up(dout, LANE)
        dtype = jnp.float32 if li == 0 else matmul_dtype   # first layer stays f32
        if (dinp, doutp) == (din, dout):
            wt_p = wt_e.astype(dtype)
        else:
            wt_p = jnp.zeros((dinp, doutp), dtype).at[:din, :dout].set(
                wt_e.astype(dtype))
        b_p = jnp.zeros((1, doutp), jnp.float32).at[0, :dout].set(
            b_e.astype(jnp.float32))
        padded_params += [wt_p, b_p]

    # ---- Batch tiling: cap tb so the grid has >= 2 steps when B allows,
    #      and only pad the batch when strictly necessary. -------------------
    tb_cap = max(SUBLANE, _round_up((B + 1) // 2, SUBLANE))
    tb_eff = min(tb, tb_cap)
    Bp = _round_up(max(B, tb_eff), tb_eff)
    grid = (Bp // tb_eff,)

    if Bp == B:
        x_p = x.astype(jnp.float32)          # no pad copy needed
    else:
        x_p = jnp.zeros((Bp, D0), jnp.float32).at[:B, :].set(
            x.astype(jnp.float32))

    alpha_arr = (jnp.stack(alphas) if num_hidden > 0
                 else jnp.zeros((1,), jnp.float32)).astype(jnp.float32)

    # ---- BlockSpecs: x/out tiled over batch, weights replicated, alphas SMEM.
    weight_kwargs = (dict(pipeline_mode=pl.Buffered(1))
                     if single_buffer_weights else {})
    in_specs = [pl.BlockSpec(memory_space=pltpu.MemorySpace.SMEM),       # alphas
                pl.BlockSpec((tb_eff, D0), lambda i: (i, 0))]            # x tile
    for p in padded_params:
        in_specs.append(pl.BlockSpec(p.shape, lambda i: (0, 0),
                                     **weight_kwargs))                   # replicated
    out_spec = pl.BlockSpec((tb_eff, Dout), lambda i: (i, 0))            # unpadded

    # ---- VMEM limit scaled with the chosen tile (clamped: safe on v7x). ----
    w_mult = 1 if single_buffer_weights else 2
    w_bytes = w_mult * sum(int(p.size) * p.dtype.itemsize for p in padded_params)
    max_w = max([D0, Dout] + [int(p.shape[-1]) for p in padded_params])
    vmem_bytes = (2 * tb_eff * D0 * 4 + 2 * tb_eff * Dout * 4 + w_bytes
                  + 3 * tb_eff * max_w * 4 + (4 << 20))
    vmem_bytes = int(min(max(vmem_bytes, 8 << 20), 48 << 20))

    y_p = pl.pallas_call(
        _make_kernel(num_hidden),
        out_shape=jax.ShapeDtypeStruct((Bp, Dout), jnp.float32),
        grid=grid,
        in_specs=in_specs,
        out_specs=out_spec,
        compiler_params=pltpu.CompilerParams(
            dimension_semantics=("parallel",),
            vmem_limit_bytes=vmem_bytes),
    )(alpha_arr, x_p, *padded_params)

    return y_p if Bp == B else y_p[:B]


def _reference_forward(x, inputs_mean, inputs_std, outputs_mean, outputs_std,
                       hidden_layers, final_layer, bn_eps=1e-5):
    """Pure-JAX, un-fused reference matching the PyTorch module exactly."""
    h = (x - inputs_mean[None, :]) / (inputs_std[None, :] + 1e-6)
    for (w, b, gamma, beta, rmean, rvar, alpha) in hidden_layers:
        h = h @ w.T + b[None, :]
        h = ((h - rmean[None, :]) / jnp.sqrt(rvar[None, :] + bn_eps)
             * gamma[None, :] + beta[None, :])
        h = jnp.where(h >= 0.0, h, alpha * h)
    w, b = final_layer
    h = h @ w.T + b[None, :]
    return h * outputs_std[None, :] + outputs_mean[None, :]


if __name__ == "__main__":
    # Small, forward-consistent shapes: dims = [D0, H1, H2, Dout].
    dims = [32, 64, 48, 16]
    B = 80

    keys = iter(jax.random.split(jax.random.PRNGKey(0), 64))

    inputs_mean = jax.random.normal(next(keys), (dims[0],), jnp.float32)
    inputs_std = jax.random.uniform(next(keys), (dims[0],), jnp.float32,
                                    minval=0.5, maxval=1.5)
    outputs_mean = jax.random.normal(next(keys), (dims[-1],), jnp.float32)
    outputs_std = jax.random.uniform(next(keys), (dims[-1],), jnp.float32,
                                     minval=0.5, maxval=1.5)

    hidden_layers = []
    for i in range(len(dims) - 2):
        din, dout = dims[i], dims[i + 1]
        bound = float(din) ** -0.5
        # nn.Linear init: U(-1/sqrt(fan_in), 1/sqrt(fan_in)); weight stored (out, in).
        w = jax.random.uniform(next(keys), (dout, din), jnp.float32, -bound, bound)
        b = jax.random.uniform(next(keys), (dout,), jnp.float32, -bound, bound)
        # BatchNorm1d eval-mode parameters / running statistics.
        gamma = jax.random.uniform(next(keys), (dout,), jnp.float32, 0.5, 1.5)
        beta = 0.1 * jax.random.normal(next(keys), (dout,), jnp.float32)
        rmean = 0.1 * jax.random.normal(next(keys), (dout,), jnp.float32)
        rvar = jax.random.uniform(next(keys), (dout,), jnp.float32, 0.5, 1.5)
        # nn.PReLU() default single parameter 0.25.
        alpha = jnp.float32(0.25)
        hidden_layers.append((w, b, gamma, beta, rmean, rvar, alpha))

    din, dout = dims[-2], dims[-1]
    bound = float(din) ** -0.5
    w_f = jax.random.uniform(next(keys), (dout, din), jnp.float32, -bound, bound)
    b_f = jax.random.uniform(next(keys), (dout,), jnp.float32, -bound, bound)
    final_layer = (w_f, b_f)

    x = jax.random.normal(next(keys), (B, dims[0]), jnp.float32)
    y_ref = _reference_forward(x, inputs_mean, inputs_std, outputs_mean,
                               outputs_std, hidden_layers, final_layer)

    # Default path: bf16 MXU operands (first layer kept f32), no batch padding
    # needed here (tb auto-capped to 40 -> Bp == B, grid of 2 parallel steps).
    y_bf16 = jax.block_until_ready(
        mlppca_forward(x, inputs_mean, inputs_std, outputs_mean, outputs_std,
                       hidden_layers, final_layer))
    assert y_bf16.shape == (B, dims[-1])
    err_bf16 = float(jnp.max(jnp.abs(y_bf16 - y_ref)))
    assert jnp.allclose(y_bf16, y_ref, atol=5e-2, rtol=5e-2), \
        f"bf16 max_err={err_bf16}"

    # Bit-tight f32 path.
    y_f32 = jax.block_until_ready(
        mlppca_forward(x, inputs_mean, inputs_std, outputs_mean, outputs_std,
                       hidden_layers, final_layer, matmul_dtype=jnp.float32))
    err_f32 = float(jnp.max(jnp.abs(y_f32 - y_ref)))
    assert jnp.allclose(y_f32, y_ref, atol=1e-3, rtol=1e-3), \
        f"f32 max_err={err_f32}"

    # Exercise the batch pad/slice path (B2 not a multiple of the tile).
    B2 = 52
    x2 = jax.random.normal(next(keys), (B2, dims[0]), jnp.float32)
    y2 = jax.block_until_ready(
        mlppca_forward(x2, inputs_mean, inputs_std, outputs_mean, outputs_std,
                       hidden_layers, final_layer, tb=32,
                       matmul_dtype=jnp.float32))
    y2_ref = _reference_forward(x2, inputs_mean, inputs_std, outputs_mean,
                                outputs_std, hidden_layers, final_layer)
    assert y2.shape == (B2, dims[-1])
    err2 = float(jnp.max(jnp.abs(y2 - y2_ref)))
    assert jnp.allclose(y2, y2_ref, atol=1e-3, rtol=1e-3), f"pad max_err={err2}"

    print("KERNEL_OK")
</pallas_src>

<mosaic_0001>
module attributes {stable_mosaic.version = 11 : i64} {
  func.func @kernel(%arg0: i32, %arg1: memref<2xf32, #tpu.memory_space<smem>>, %arg2: memref<40x32xf32, #tpu.memory_space<vmem>>, %arg3: memref<32x128xf32, #tpu.memory_space<vmem>>, %arg4: memref<1x128xf32, #tpu.memory_space<vmem>>, %arg5: memref<128x128xbf16, #tpu.memory_space<vmem>>, %arg6: memref<1x128xf32, #tpu.memory_space<vmem>>, %arg7: memref<128x16xbf16, #tpu.memory_space<vmem>>, %arg8: memref<1x16xf32, #tpu.memory_space<vmem>>, %arg9: memref<40x16xf32, #tpu.memory_space<vmem>>) attributes {dimension_semantics = [#tpu.dimension_semantics<parallel>], iteration_bounds = array<i64: 2>, scalar_prefetch = 0 : i64, scratch_operands = 0 : i64, tpu.core_type = #tpu.core_type<tc>, window_params = [{transform_indices = @transform_0, window_bounds = array<i64: 2>}, {transform_indices = @transform_1, window_bounds = array<i64: 40, 32>}, {pipeline_mode = #tpu.pipeline_mode<synchronous>, transform_indices = @transform_2, window_bounds = array<i64: 32, 128>}, {pipeline_mode = #tpu.pipeline_mode<synchronous>, transform_indices = @transform_3, window_bounds = array<i64: 1, 128>}, {pipeline_mode = #tpu.pipeline_mode<synchronous>, transform_indices = @transform_4, window_bounds = array<i64: 128, 128>}, {pipeline_mode = #tpu.pipeline_mode<synchronous>, transform_indices = @transform_5, window_bounds = array<i64: 1, 128>}, {pipeline_mode = #tpu.pipeline_mode<synchronous>, transform_indices = @transform_6, window_bounds = array<i64: 128, 16>}, {pipeline_mode = #tpu.pipeline_mode<synchronous>, transform_indices = @transform_7, window_bounds = array<i64: 1, 16>}, {transform_indices = @transform_8, window_bounds = array<i64: 40, 16>}]} {
    %c0 = arith.constant 0 : index
    %c0_0 = arith.constant 0 : index
    %0 = vector.load %arg2[%c0, %c0_0] : memref<40x32xf32, #tpu.memory_space<vmem>>, vector<40x32xf32>
    %c0_1 = arith.constant 0 : index
    %c0_2 = arith.constant 0 : index
    %1 = vector.load %arg3[%c0_1, %c0_2] : memref<32x128xf32, #tpu.memory_space<vmem>>, vector<32x128xf32>
    %cst = arith.constant dense<0.000000e+00> : vector<40x128xf32>
    %2 = tpu.matmul %0, %1, %cst {dimension_numbers = #tpu.dot_dimension_numbers<[1], [0], [0], [1], [0, 0, 1, 1], [], []>} : vector<40x32xf32>, vector<32x128xf32>, vector<40x128xf32> -> vector<40x128xf32>
    %c0_3 = arith.constant 0 : index
    %c0_4 = arith.constant 0 : index
    %3 = vector.load %arg4[%c0_3, %c0_4] : memref<1x128xf32, #tpu.memory_space<vmem>>, vector<1x128xf32>
    %4 = vector.broadcast %3 : vector<1x128xf32> to vector<40x128xf32>
    %5 = arith.addf %2, %4 : vector<40x128xf32>
    %c0_5 = arith.constant 0 : index
    %6 = memref.load %arg1[%c0_5] : memref<2xf32, #tpu.memory_space<smem>>
    %cst_6 = arith.constant 0.000000e+00 : f32
    %7 = vector.broadcast %cst_6 : f32 to vector<40x128xf32>
    %8 = arith.cmpf oge, %5, %7 : vector<40x128xf32>
    %9 = vector.broadcast %6 : f32 to vector<40x128xf32>
    %10 = arith.mulf %9, %5 : vector<40x128xf32>
    %11 = arith.select %8, %5, %10 : vector<40x128xi1>, vector<40x128xf32>
    %12 = arith.truncf %11 : vector<40x128xf32> to vector<40x128xbf16>
    %c0_7 = arith.constant 0 : index
    %c0_8 = arith.constant 0 : index
    %13 = vector.load %arg5[%c0_7, %c0_8] : memref<128x128xbf16, #tpu.memory_space<vmem>>, vector<128x128xbf16>
    %cst_9 = arith.constant dense<0.000000e+00> : vector<40x128xf32>
    %14 = tpu.matmul %12, %13, %cst_9 {dimension_numbers = #tpu.dot_dimension_numbers<[1], [0], [0], [1], [0, 0, 1, 1], [], []>} : vector<40x128xbf16>, vector<128x128xbf16>, vector<40x128xf32> -> vector<40x128xf32>
    %c0_10 = arith.constant 0 : index
    %c0_11 = arith.constant 0 : index
    %15 = vector.load %arg6[%c0_10, %c0_11] : memref<1x128xf32, #tpu.memory_space<vmem>>, vector<1x128xf32>
    %16 = vector.broadcast %15 : vector<1x128xf32> to vector<40x128xf32>
    %17 = arith.addf %14, %16 : vector<40x128xf32>
    %c1 = arith.constant 1 : index
    %18 = memref.load %arg1[%c1] : memref<2xf32, #tpu.memory_space<smem>>
    %cst_12 = arith.constant 0.000000e+00 : f32
    %19 = vector.broadcast %cst_12 : f32 to vector<40x128xf32>
    %20 = arith.cmpf oge, %17, %19 : vector<40x128xf32>
    %21 = vector.broadcast %18 : f32 to vector<40x128xf32>
    %22 = arith.mulf %21, %17 : vector<40x128xf32>
    %23 = arith.select %20, %17, %22 : vector<40x128xi1>, vector<40x128xf32>
    %24 = arith.truncf %23 : vector<40x128xf32> to vector<40x128xbf16>
    %c0_13 = arith.constant 0 : index
    %c0_14 = arith.constant 0 : index
    %25 = vector.load %arg7[%c0_13, %c0_14] : memref<128x16xbf16, #tpu.memory_space<vmem>>, vector<128x16xbf16>
    %cst_15 = arith.constant dense<0.000000e+00> : vector<40x16xf32>
    %26 = tpu.matmul %24, %25, %cst_15 {dimension_numbers = #tpu.dot_dimension_numbers<[1], [0], [0], [1], [0, 0, 1, 1], [], []>} : vector<40x128xbf16>, vector<128x16xbf16>, vector<40x16xf32> -> vector<40x16xf32>
    %c0_16 = arith.constant 0 : index
    %c0_17 = arith.constant 0 : index
    %27 = vector.load %arg8[%c0_16, %c0_17] : memref<1x16xf32, #tpu.memory_space<vmem>>, vector<1x16xf32>
    %28 = vector.broadcast %27 : vector<1x16xf32> to vector<40x16xf32>
    %29 = arith.addf %26, %28 : vector<40x16xf32>
    %c0_18 = arith.constant 0 : index
    %c0_19 = arith.constant 0 : index
    %30 = vector.load %arg9[%c0_18, %c0_19] : memref<40x16xf32, #tpu.memory_space<vmem>>, vector<40x16xf32>
    tpu.vector_store %arg9[%c0_18, %c0_19], %29 {strides = array<i32>} : memref<40x16xf32, #tpu.memory_space<vmem>>, vector<40x16xf32>,
    return
  }
  func.func @transform_0(%arg0: i32) -> i32 {
    %c0_i32 = arith.constant 0 : i32
    %c0_i32_0 = arith.constant 0 : i32
    return %c0_i32 : i32
  }
  func.func @transform_1(%arg0: i32) -> (i32, i32) {
    %c0_i32 = arith.constant 0 : i32
    %c0_i32_0 = arith.constant 0 : i32
    return %arg0, %c0_i32 : i32, i32
  }
  func.func @transform_2(%arg0: i32) -> (i32, i32) {
    %c0_i32 = arith.constant 0 : i32
    %c0_i32_0 = arith.constant 0 : i32
    %c0_i32_1 = arith.constant 0 : i32
    return %c0_i32, %c0_i32_0 : i32, i32
  }
  func.func @transform_3(%arg0: i32) -> (i32, i32) {
    %c0_i32 = arith.constant 0 : i32
    %c0_i32_0 = arith.constant 0 : i32
    %c0_i32_1 = arith.constant 0 : i32
    return %c0_i32, %c0_i32_0 : i32, i32
  }
  func.func @transform_4(%arg0: i32) -> (i32, i32) {
    %c0_i32 = arith.constant 0 : i32
    %c0_i32_0 = arith.constant 0 : i32
    %c0_i32_1 = arith.constant 0 : i32
    return %c0_i32, %c0_i32_0 : i32, i32
  }
  func.func @transform_5(%arg0: i32) -> (i32, i32) {
    %c0_i32 = arith.constant 0 : i32
    %c0_i32_0 = arith.constant 0 : i32
    %c0_i32_1 = arith.constant 0 : i32
    return %c0_i32, %c0_i32_0 : i32, i32
  }
  func.func @transform_6(%arg0: i32) -> (i32, i32) {
    %c0_i32 = arith.constant 0 : i32
    %c0_i32_0 = arith.constant 0 : i32
    %c0_i32_1 = arith.constant 0 : i32
    return %c0_i32, %c0_i32_0 : i32, i32
  }
  func.func @transform_7(%arg0: i32) -> (i32, i32) {
    %c0_i32 = arith.constant 0 : i32
    %c0_i32_0 = arith.constant 0 : i32
    %c0_i32_1 = arith.constant 0 : i32
    return %c0_i32, %c0_i32_0 : i32, i32
  }
  func.func @transform_8(%arg0: i32) -> (i32, i32) {
    %c0_i32 = arith.constant 0 : i32
    %c0_i32_0 = arith.constant 0 : i32
    return %arg0, %c0_i32 : i32, i32
  }
}

</mosaic_0001>

<bundles_post_ra>
// kernel: tpu_custom_call.1
= control target key start
LH: loop header
LB: loop body
LE: loop exit
PB: predicated region body
PF: predicated region fallthrough
CT: control target
= control target key end

     0   :  { %13 = vsyncpa [#allocation3], 0  ;;  %s1080_s27 = smov 0   ;;  %s1246_s0 = inlined_call_operand.vmem [shape: f32[2], index: 0, kind: input, shape index: {}]   ;;  %s1247_s1 = inlined_call_operand.vmem [shape: f32[80,32], index: 1, kind: input, shape index: {}]   ;;  %s1248_s2 = inlined_call_operand.vmem [shape: f32[32,128], index: 2, kind: input, shape index: {}]   ;;  %s1249_s3 = inlined_call_operand.vmem [shape: f32[1,128], index: 3, kind: input, shape index: {}]   ;;  %s1250_s4 = inlined_call_operand.vmem [shape: bf16[128,128], index: 4, kind: input, shape index: {}]   ;;  %s1251_s5 = inlined_call_operand.vmem [shape: f32[1,128], index: 5, kind: input, shape index: {}]   ;;  %s1252_s6 = inlined_call_operand.vmem [shape: bf16[128,16], index: 6, kind: input, shape index: {}]   ;;  %s1253_s7 = inlined_call_operand.vmem [shape: f32[1,16], index: 7, kind: input, shape index: {}]   ;;  %s1254_s8 = inlined_call_operand.vmem [shape: f32[80,16], index: 8, kind: output, shape index: {}]  }
   0x1 LB: > { %s814_s28 = sadd.s32 4294967295, %s1029_s27   ;;  %p816_p0 = scmp.ge.s32.totalorder %s1029_s27, 1  ;;  %s1029_s27 = sphi %s1080_s27, %s19_s27  }
   0x2   : > { %p223_p1 = scmp.lt.s32.totalorder %s1029_s27, 3  ;;  %s236_s9 = sshll.u32 %s1246_s0, 4  ;;  %s237_s9 = int_to_ptr.vmem [resolvable:$true] %s236_s9 }
   0x3   : > { %p1097_p3 = scmp.eq.s32.totalorder %s814_s28, 0  ;;  %s1004_s12 = scalar_lea.vmem %s237_s9, 16 }
   0x4   : > { %p1091_p2 = pnand %p816_p0, %p223_p1  ;;  %p1005_p6 = scmp.ne.s32.totalorder %s237_s9, %s1004_s12 }
   0x5   : > { %p1012_p10 = scmp.lt.s32.totalorder %s237_s9, %s237_s9  ;;  %p1013_p11 = scmp.lt.s32.totalorder %s1004_s12, %s1004_s12 }
   0x6   : > { %p970_p4 = pneg %p1091_p2 }
   0x7   : > { %p1014_p12 = por %p1013_p11, %p1012_p10 }
   0x8   : > { %p971_p5 = pnand %p1097_p3, %p970_p4 }
   0xa   : > { %p1006_p7 = pneg %p971_p5 }
   0xc   : > { %p1007_p8 = pnand %p1006_p7, %p1005_p6 }
   0xe   : > { %p1008_p9 = pneg %p1007_p8 }
  0x10   : > { %p1015_p13 = pnand %p1014_p12, %p1008_p9 }
  0x12   : > { %1018 = shalt.err (!%p1015_p13)
}
  0x13   : > { %s1031_s13 = smov [#allocation2]   ;;  %276 = sbr.rel (%p1091_p2) target bundleno = 714 (0x2ca), region = 52 }
  0x14   : > { %973 = dma.vmem_to_smem (!%p971_p5), %s237_s9, 16, %s1031_s13, [#allocation3]  }
  0x1a   : > { %1024 = dma.done.wait (%p1097_p3), [#allocation3], 16  }
  0x1b   : > { %1026 = vsyncadd (%p1097_p3), [#allocation3], 4294967280 }
  0x1c   : > { %282 = sfence }
  0x1d   : > { %v329_v0 = vld [vmem:[%s1248_s2] sm:$0xff]  ;;  %v330_v1 = vld [vmem:[%s1248_s2 + $0x8] sm:$0xff]  ;;  %v331_v2 = vld [vmem:[%s1248_s2 + $0x10] sm:$0xff]  ;;  %v1032_v3 = vmov 0.0|0.0   ;;  %vm1033_vm0 = vmmov 0   ;;  %v1034_v6 = vmov 0.0  }
  0x1e   : > { %960 = vmatprep.subr.bf16.mxu0 %v1032_v3  ;;  %v961_v4 = vpack.c.bf16 %v330_v1, %v329_v0  ;;  %v332_v5 = vld [vmem:[%s1248_s2 + $0x18] sm:$0xff]  ;;  %889 = vmatprep.mubr.msk.f32.mxu0 %vm1033_vm0, %v1034_v6  ;;  %s311_s22 = smul.u32 5, %s814_s28  ;;  %v988_v7 = vld [vmem:[%s1250_s4] sm:$0xff]   ;;  %v989_v9 = vld [vmem:[%s1250_s4 + $0x8] sm:$0xff]   ;;  %vm340_vm1 = vcmask 261120   ;;  %s446_s15 = sld [smem:[#allocation2]] }
  0x1f   : > { %904 = vmatprep.subr.bf16.mxu1 %v1034_v6  ;;  %920 = vmatprep.mubr.msk.bf16.mxu1 %vm1033_vm0, %v1034_v6  ;;  %v964_v8 = vpack.c.bf16 %v332_v5, %v331_v2  ;;  %v990_v10 = vld [vmem:[%s1250_s4 + $0x10] sm:$0xff]   ;;  %v991_v13 = vld [vmem:[%s1250_s4 + $0x18] sm:$0xff]   ;;  %v992_v15 = vld [vmem:[%s1250_s4 + $0x20] sm:$0xff]   ;;  %s838_s23 = sld [smem:[#allocation2 + $0x1]]  ;;  %vm740_vm12 = vcmask 130048  }
  0x20   : > { %962 = vmatpush3.bf16.msra.mxu0 %v961_v4  ;;  %p312_p0 = scmp.lt.s32.totalorder %s311_s22, 9  ;;  %905 = vmatpush3.bf16.msra.mxu1 %v988_v7  ;;  %v993_v18 = vld [vmem:[%s1250_s4 + $0x28] sm:$0xff]   ;;  %v994_v19 = vld [vmem:[%s1250_s4 + $0x30] sm:$0xff]   ;;  %v995_v20 = vld [vmem:[%s1250_s4 + $0x38] sm:$0xff]  }
  0x21   : > { %963 = vmatprep.subr.bf16.mxu0 %v1032_v3  ;;  %906 = vmatprep.subr.bf16.mxu1 %v1034_v6  ;;  %v996_v21 = vld [vmem:[%s1252_s6] sm:$0xff]   ;;  %v997_v22 = vld [vmem:[%s1252_s6 + $0x8] sm:$0xff]   ;;  %v998_v23 = vld [vmem:[%s1252_s6 + $0x10] sm:$0xff]  }
  0x22   : > { %s1258_s22 = smov (!%p312_p0, %s311_s22), 9  ;;  %v999_v24 = vld [vmem:[%s1252_s6 + $0x18] sm:$0xff]   ;;  %v1000_v25 = vld [vmem:[%s1252_s6 + $0x20] sm:$0xff]   ;;  %v1001_v26 = vld [vmem:[%s1252_s6 + $0x28] sm:$0xff]  }
  0x23   : > { %s821_s28 = sshll.u32 %s1258_s22, 3  ;;  %v823_v27 = vld [vmem:[%s1249_s3] ss:$0 sm:$0xff]  ;;  %v1002_v57 = vld [vmem:[%s1252_s6 + $0x30] sm:$0xff]   ;;  %v1003_v58 = vld [vmem:[%s1252_s6 + $0x38] sm:$0xff]  }
  0x24   : > { %965 = vmatpush3.bf16.msra.mxu0 %v964_v8  ;;  %907 = vmatpush3.bf16.msra.mxu1 %v989_v9  ;;  %s315_s11 = scalar_lea.vmem %s1247_s1, %s821_s28  ;;  %v452_v31 = vstv %s446_s15  ;;  %v829_v59 = vld [vmem:[%s1251_s5] ss:$0 sm:$0xff]  ;;  %s321_s10 = scalar_lea.vmem %s1254_s8, %s821_s28 }
  0x25   : > { %908 = vmatprep.subr.bf16.mxu1 %v1034_v6  ;;  %932 = vmatprep.subr.bf16.mxu0 %v1034_v6  ;;  %v324_v11 = vld [vmem:[%s315_s11] sm:$0xff]  ;;  %v325_v12 = vld [vmem:[%s315_s11 + $0x8] sm:$0xff]  ;;  %v326_v14 = vld [vmem:[%s315_s11 + $0x10] sm:$0xff]  ;;  %v599_v61 = vstv %s838_s23 }
  0x26   : > { %v327_v16 = vld [vmem:[%s315_s11 + $0x18] sm:$0xff]  ;;  %v328_v17 = vld [vmem:[%s315_s11 + $0x20] sm:$0xff] }
  0x27   : > { %890 = vmatmul.mubr.msk.f32.vlgmr.msra.gmra.mrb[0].mxu0 %vm340_vm1, %v324_v11 }
  0x28   : > { %892 = vmatprep.mubr.msk.f32.mxu0 %vm1033_vm0, %v1034_v6  ;;  %909 = vmatpush3.bf16.msra.mxu1 %v990_v10 }
  0x29   : > { %910 = vmatprep.subr.bf16.mxu1 %v1034_v6  ;;  %933 = vmatpush3.bf16.msra.mxu0 %v996_v21 }
  0x2a   : > { %934 = vmatprep.subr.bf16.mxu0 %v1034_v6 }
  0x2b   : > { %893 = vmatmul.mubr.msk.f32.gmra.mrb[2].mxu0 %vm340_vm1, %v325_v12 }
  0x2c   : > { %895 = vmatprep.mubr.msk.f32.mxu0 %vm1033_vm0, %v1034_v6  ;;  %911 = vmatpush3.bf16.msra.mxu1 %v991_v13 }
  0x2d   : > { %912 = vmatprep.subr.bf16.mxu1 %v1034_v6  ;;  %935 = vmatpush3.bf16.msra.mxu0 %v997_v22 }
  0x2e   : > { %936 = vmatprep.subr.bf16.mxu0 %v1034_v6 }
  0x2f   : > { %896 = vmatmul.mubr.msk.f32.gmra.mrb[4].mxu0 %vm340_vm1, %v326_v14 }
  0x30   : > { %898 = vmatprep.mubr.msk.f32.mxu0 %vm1033_vm0, %v1034_v6  ;;  %913 = vmatpush3.bf16.msra.mxu1 %v992_v15 }
  0x31   : > { %914 = vmatprep.subr.bf16.mxu1 %v1034_v6  ;;  %937 = vmatpush3.bf16.msra.mxu0 %v998_v23 }
  0x32   : > { %938 = vmatprep.subr.bf16.mxu0 %v1034_v6 }
  0x33   : > { %899 = vmatmul.mubr.msk.f32.gmra.mrb[6].mxu0 %vm340_vm1, %v327_v16 }
  0x34   : > { %901 = vmatprep.mubr.msk.f32.mxu0 %vm1033_vm0, %v1034_v6  ;;  %915 = vmatpush3.bf16.msra.mxu1 %v993_v18 }
  0x35   : > { %916 = vmatprep.subr.bf16.mxu1 %v1034_v6  ;;  %939 = vmatpush3.bf16.msra.mxu0 %v999_v24 }
  0x36   : > { %940 = vmatprep.subr.bf16.mxu0 %v1034_v6 }
  0x37   : > { %902 = vmatmul.mubr.msk.f32.gmra.mrb[8].mxu0 %vm340_vm1, %v328_v17 }
  0x38   : > { %948 = vmatprep.mubr.msk.bf16.mxu0 %vm1033_vm0, %v1034_v6  ;;  %917 = vmatpush3.bf16.msra.mxu1 %v994_v19 }
  0x39   : > { %918 = vmatprep.subr.bf16.mxu1 %v1034_v6  ;;  %941 = vmatpush3.bf16.msra.mxu0 %v1000_v25 }
  0x3a   : > { %942 = vmatprep.subr.bf16.mxu0 %v1034_v6 }
  0x3c   : > { %919 = vmatpush3.bf16.msra.mxu1 %v995_v20 }
  0x3d   : > { %943 = vmatpush3.bf16.msra.mxu0 %v1001_v26 }
  0x3e   : > { %944 = vmatprep.subr.bf16.mxu0 %v1034_v6 }
  0x41   : > { %945 = vmatpush3.bf16.msra.mxu0 %v1002_v57 }
  0x42   : > { %946 = vmatprep.subr.bf16.mxu0 %v1034_v6 }
  0x45   : > { %947 = vmatpush3.bf16.msra.mxu0 %v1003_v58 }
  0xfa   : > { %v422_v28 = vpop.f32.mrb[0].mxu0 }
  0xfb   : > { %v423_v29 = vadd.f32 %v823_v27, %v422_v28  ;;  %v891_v30 = vpop.f32.mrb[1].mxu0  ;;  %v839_v28 = vld [vmem:[%s1253_s7] ss:$0 sm:$0xff] }
  0xfd   : > { %v453_v33 = vmul.f32 %v452_v31, %v423_v29  ;;  %vm447_vm2 = vcmp.ge.f32.partialorder %v423_v29, 0.0 }
  0xfe   : > { %v427_v32 = vpop.f32.mrb[2].mxu0 }
  0xff   : > { %v428_v34 = vadd.f32 %v823_v27, %v427_v32  ;;  %v894_v35 = vpop.f32.mrb[3].mxu0  ;;  %v458_v40 = vsel %vm447_vm2, %v423_v29, %v453_v33 }
 0x101   : > { %vm448_vm3 = vcmp.ge.f32.partialorder %v428_v34, 0.0  ;;  %v454_v36 = vmul.f32 %v452_v31, %v428_v34 }
 0x102   : > { %v432_v37 = vpop.f32.mrb[4].mxu0 }
 0x103   : > { %v433_v38 = vadd.f32 %v823_v27, %v432_v37  ;;  %v897_v39 = vpop.f32.mrb[5].mxu0  ;;  %v459_v41 = vsel %vm448_vm3, %v428_v34, %v454_v36 }
 0x104   : > { %v463_v42 = vpack.c.bf16 %v459_v41, %v458_v40 }
 0x105   : > { %v455_v44 = vmul.f32 %v452_v31, %v433_v38  ;;  %vm449_vm4 = vcmp.ge.f32.partialorder %v433_v38, 0.0 }
 0x106   : > { %v437_v43 = vpop.f32.mrb[6].mxu0  ;;  %921 = vmatmul.mubr.bf16.vlgmr.msra.gmra.mrb[0].mxu1 %v463_v42 }
 0x107   : > { %v438_v45 = vadd.f32 %v823_v27, %v437_v43  ;;  %v900_v46 = vpop.f32.mrb[7].mxu0  ;;  %924 = vmatprep.mubr.msk.bf16.mxu1 %vm1033_vm0, %v1034_v6  ;;  %v460_v50 = vsel %vm449_vm4, %v433_v38, %v455_v44 }
 0x109   : > { %vm450_vm5 = vcmp.ge.f32.partialorder %v438_v45, 0.0  ;;  %v456_v47 = vmul.f32 %v452_v31, %v438_v45 }
 0x10a   : > { %v442_v48 = vpop.f32.mrb[8].mxu0 }
 0x10b   : > { %v443_v49 = vadd.f32 %v823_v27, %v442_v48  ;;  %v461_v51 = vsel %vm450_vm5, %v438_v45, %v456_v47  ;;  %v903_v52 = vpop.f32.mrb[9].mxu0 }
 0x10c   : > { %v464_v53 = vpack.c.bf16 %v461_v51, %v460_v50 }
 0x10d   : > { %vm451_vm6 = vcmp.ge.f32.partialorder %v443_v49, 0.0  ;;  %v457_v54 = vmul.f32 %v452_v31, %v443_v49 }
 0x10e   : > { %925 = vmatmul.mubr.bf16.gmra.mrb[4].mxu1 %v464_v53 }
 0x10f   : > { %928 = vmatprep.mubr.msk.bf16.mxu1 %vm1033_vm0, %v1034_v6  ;;  %v462_v55 = vsel %vm451_vm6, %v443_v49, %v457_v54 }
 0x110   : > { %v465_v56 = vpack.c.bf16 %v462_v55, %v462_v55 }
 0x116   : > { %929 = vmatmul.mubr.bf16.gmra.mrb[8].mxu1 %v465_v56 }
 0x1d9   : > { %v571_v60 = vpop.f32.mrb[0].mxu1 }
 0x1da   : > { %v572_v62 = vadd.f32 %v829_v59, %v571_v60  ;;  %v922_v63 = vpop.f32.mrb[1].mxu1 }
 0x1db   : > { %v574_v0 = vpop.f32.mrb[2].mxu1 }
 0x1dc   : > { %v600_v1 = vmul.f32 %v599_v61, %v572_v62  ;;  %v575_v2 = vadd.f32 %v829_v59, %v574_v0  ;;  %v923_v3 = vpop.f32.mrb[3].mxu1  ;;  %vm594_vm7 = vcmp.ge.f32.partialorder %v572_v62, 0.0 }
 0x1de   : > { %vm595_vm8 = vcmp.ge.f32.partialorder %v575_v2, 0.0  ;;  %v601_v4 = vmul.f32 %v599_v61, %v575_v2  ;;  %v605_v5 = vsel %vm594_vm7, %v572_v62, %v600_v1 }
 0x1e0   : > { %v606_v7 = vsel %vm595_vm8, %v575_v2, %v601_v4 }
 0x1e1   : > { %v610_v8 = vpack.c.bf16 %v606_v7, %v605_v5  ;;  %v579_v9 = vpop.f32.mrb[4].mxu1 }
 0x1e2   : > { %v580_v10 = vadd.f32 %v829_v59, %v579_v9  ;;  %v926_v11 = vpop.f32.mrb[5].mxu1 }
 0x1e3   : > { %v582_v12 = vpop.f32.mrb[6].mxu1  ;;  %949 = vmatmul.mubr.bf16.vlgmr.msra.gmra.mrb[12].mxu0 %v610_v8 }
 0x1e4   : > { %v602_v13 = vmul.f32 %v599_v61, %v580_v10  ;;  %v583_v14 = vadd.f32 %v829_v59, %v582_v12  ;;  %v927_v15 = vpop.f32.mrb[7].mxu1  ;;  %952 = vmatprep.mubr.msk.bf16.mxu0 %vm1033_vm0, %v1034_v6  ;;  %vm596_vm9 = vcmp.ge.f32.partialorder %v580_v10, 0.0 }
 0x1e6   : > { %vm597_vm10 = vcmp.ge.f32.partialorder %v583_v14, 0.0  ;;  %v603_v16 = vmul.f32 %v599_v61, %v583_v14  ;;  %v607_v17 = vsel %vm596_vm9, %v580_v10, %v602_v13 }
 0x1e8   : > { %v608_v18 = vsel %vm597_vm10, %v583_v14, %v603_v16 }
 0x1e9   : > { %v587_v19 = vpop.f32.mrb[8].mxu1  ;;  %v611_v20 = vpack.c.bf16 %v608_v18, %v607_v17 }
 0x1ea   : > { %v588_v21 = vadd.f32 %v829_v59, %v587_v19  ;;  %v930_v22 = vpop.f32.mrb[9].mxu1 }
 0x1eb   : > { %v590_v23 = vpop.f32.mrb[10].mxu1  ;;  %953 = vmatmul.mubr.bf16.gmra.mrb[16].mxu0 %v611_v20 }
 0x1ec   : > { %vm598_vm11 = vcmp.ge.f32.partialorder %v588_v21, 0.0  ;;  %v604_v24 = vmul.f32 %v599_v61, %v588_v21  ;;  %v931_v25 = vpop.f32.mrb[11].mxu1  ;;  %956 = vmatprep.mubr.msk.bf16.mxu0 %vm1033_vm0, %v1034_v6 }
 0x1ee   : > { %v609_v26 = vsel %vm598_vm11, %v588_v21, %v604_v24 }
 0x1ef   : > { %v612_v27 = vpack.c.bf16 %v609_v26, %v609_v26 }
 0x1f3   : > { %957 = vmatmul.mubr.bf16.gmra.mrb[20].mxu0 %v612_v27 }
 0x2b6   : > { %v718_v29 = vpop.f32.mrb[12].mxu0 }
 0x2b7   : > { %v719_v30 = vadd.f32 %v839_v28, %v718_v29  ;;  %v950_v31 = vpop.f32.mrb[13].mxu0 }
 0x2b8   : > { %v721_v32 = vpop.f32.mrb[14].mxu0 }
 0x2b9   : > { %741 = vst.msk [vmem:[%s321_s10] sm:$0xff] %vm740_vm12, %v719_v30  ;;  %v722_v6 = vadd.f32 %v839_v28, %v721_v32  ;;  %v951_v33 = vpop.f32.mrb[15].mxu0 }
 0x2bb   : > { %742 = vst.msk [vmem:[%s321_s10 + $0x8] sm:$0xff] %vm740_vm12, %v722_v6 }
 0x2be   : > { %v726_v34 = vpop.f32.mrb[16].mxu0 }
 0x2bf   : > { %v727_v35 = vadd.f32 %v839_v28, %v726_v34  ;;  %v954_v36 = vpop.f32.mrb[17].mxu0 }
 0x2c0   : > { %v729_v37 = vpop.f32.mrb[18].mxu0 }
 0x2c1   : > { %743 = vst.msk [vmem:[%s321_s10 + $0x10] sm:$0xff] %vm740_vm12, %v727_v35  ;;  %v730_v38 = vadd.f32 %v839_v28, %v729_v37  ;;  %v955_v39 = vpop.f32.mrb[19].mxu0 }
 0x2c3   : > { %744 = vst.msk [vmem:[%s321_s10 + $0x18] sm:$0xff] %vm740_vm12, %v730_v38 }
 0x2c6   : > { %v734_v40 = vpop.f32.mrb[20].mxu0 }
 0x2c7   : > { %v735_v41 = vadd.f32 %v839_v28, %v734_v40  ;;  %v958_v42 = vpop.f32.mrb[21].mxu0 }
 0x2c8   : > { %v737_v43 = vpop.f32.mrb[22].mxu0 }
 0x2c9   : > { %745 = vst.msk [vmem:[%s321_s10 + $0x20] sm:$0xff] %vm740_vm12, %v735_v41  ;;  %v959_v44 = vpop.f32.mrb[23].mxu0 }
 0x2ca PF: > { %s19_s27 = sadd.s32 1, %s1029_s27  }
 0x2cb   : > { %p16_p1 = scmp.ge.s32.totalorder %s19_s27, 4  }
 0x2cd   :  { %18 = sbr.rel (!%p16_p1) target bundleno = 1 (0x1), region = 87 }
 0x2d4   :  { %768 = vsyncpa [#allocation3], 1 }
 0x2d5   :  { %770 = vsyncpa [#allocation3 + $0x1], 1 }

</bundles_post_ra>
